<compile_context>
chip_gen: v5e
topology: v5e:2x2
jax: 0.10.0
libtpu: 0.0.40
codegen_flags: <defaults>
</compile_context>

<pallas_src>
import jax
import jax.numpy as jnp
from jax.experimental import pallas as pl
from jax.experimental.pallas import tpu as pltpu


# ----------------------------------------------------------------------------
# Stage 1: HW = ReLU(LayerNorm(x)) @ W          (computed once per row tile)
# ----------------------------------------------------------------------------
def _ln_relu_linear_kernel(x_ref, w_ref, gamma_ref, beta_ref, hw_ref):
    x = x_ref[...].astype(jnp.float32)            # [TM, C]
    gamma = gamma_ref[...].astype(jnp.float32)    # [1, C]
    beta = beta_ref[...].astype(jnp.float32)      # [1, C]

    # LayerNorm over channels (f32 math — v5e VPU has no bf16).
    mean = jnp.mean(x, axis=-1, keepdims=True)
    xc = x - mean
    var = jnp.mean(xc * xc, axis=-1, keepdims=True)
    h = xc * jax.lax.rsqrt(var + 1e-5) * gamma + beta

    # ReLU; dropout (p=0 / eval) is the identity.
    h = jnp.maximum(h, 0.0)

    # Small C x C matmul on the MXU, f32 accumulation; store HW in bf16 for
    # the memory-bound aggregation stage.
    hw = jnp.dot(h, w_ref[...].astype(jnp.float32),
                 preferred_element_type=jnp.float32)
    hw_ref[...] = hw.astype(hw_ref.dtype)


# ----------------------------------------------------------------------------
# Stage 2: out = x + A_hat @ HW + b    (tiled reduction over k with f32 acc)
# ----------------------------------------------------------------------------
def _aggregate_residual_kernel(a_ref, hw_ref, x_ref, b_ref, out_ref, acc_ref):
    k = pl.program_id(1)

    @pl.when(k == 0)
    def _():
        acc_ref[...] = jnp.zeros_like(acc_ref)

    # [TM, TK] (bf16) @ [TK, C] (bf16) -> f32 accumulate on the MXU.
    acc_ref[...] += jnp.dot(a_ref[...], hw_ref[...],
                            preferred_element_type=jnp.float32)

    @pl.when(k == pl.num_programs(1) - 1)
    def _():
        # Fold bias + residual into the finalize: one lane-dense store/tile.
        out_ref[...] = (x_ref[...].astype(jnp.float32)
                        + acc_ref[...]
                        + b_ref[...].astype(jnp.float32)).astype(out_ref.dtype)


# ----------------------------------------------------------------------------
# Wrapper
# ----------------------------------------------------------------------------
def _pick_tile(n, candidates):
    for t in candidates:
        if t <= n and n % t == 0:
            return t
    return n  # fall back to full extent (always layout-legal)


def deepgcn_layer(x, a_hat, w, b, gamma, beta, *, tm=None, tk=None):
    """DeepGCN "res+" layer: x + GCNConv(ReLU(LayerNorm(x))).

    x:     [N, C] node features
    a_hat: [N, N] normalized adjacency (D^-1/2 (A+I) D^-1/2)
    w:     [C, C] GCNConv weight, b: [C] bias
    gamma, beta: [C] LayerNorm affine params
    """
    N, C = x.shape

    # Tile sizes: row tile multiple of 8 (sublane), reduction tile multiple
    # of 128 (lane axis of the A block). Kept modest so double-buffered tiles
    # fit comfortably inside the default 32 MiB scoped VMEM on every
    # generation (incl. v7x's 64 MiB total VMEM).
    if tm is None:
        tm = _pick_tile(N, (256, 128, 64, 32, 16, 8))
    if tk is None:
        tk = _pick_tile(N, (512, 256, 128))
    assert N % tm == 0 and N % tk == 0, "N must be divisible by tm and tk"

    b2 = b.reshape(1, C)
    gamma2 = gamma.reshape(1, C)
    beta2 = beta.reshape(1, C)

    # --- Stage 1: HW = ReLU(LN(x)) @ W, once per row tile, stored as bf16 ---
    hw = pl.pallas_call(
        _ln_relu_linear_kernel,
        out_shape=jax.ShapeDtypeStruct((N, C), jnp.bfloat16),
        grid_spec=pltpu.PrefetchScalarGridSpec(
            num_scalar_prefetch=0,
            grid=(N // tm,),
            in_specs=[
                pl.BlockSpec((tm, C), lambda i: (i, 0)),   # x tile
                pl.BlockSpec((C, C), lambda i: (0, 0)),    # W (resident)
                pl.BlockSpec((1, C), lambda i: (0, 0)),    # gamma
                pl.BlockSpec((1, C), lambda i: (0, 0)),    # beta
            ],
            out_specs=pl.BlockSpec((tm, C), lambda i: (i, 0)),
        ),
        compiler_params=pltpu.CompilerParams(
            dimension_semantics=("parallel",)),
    )(x, w, gamma2, beta2)

    # Cast the dominant HBM stream (A_hat) to bf16 once; values are in [0, 1].
    a_bf16 = a_hat if a_hat.dtype == jnp.bfloat16 else a_hat.astype(jnp.bfloat16)

    # --- Stage 2: tiled A @ HW reduction + bias + residual ---
    out = pl.pallas_call(
        _aggregate_residual_kernel,
        out_shape=jax.ShapeDtypeStruct((N, C), x.dtype),
        grid_spec=pltpu.PrefetchScalarGridSpec(
            num_scalar_prefetch=0,
            grid=(N // tm, N // tk),   # (row tile i, reduction tile k) — k last
            in_specs=[
                # A_hat tile; if DMA is still exposed at large N, consider
                # pipeline_mode=pl.Buffered(3) here (one extra tile of VMEM).
                pl.BlockSpec((tm, tk), lambda i, k: (i, k)),
                pl.BlockSpec((tk, C), lambda i, k: (k, 0)),   # HW tile
                pl.BlockSpec((tm, C), lambda i, k: (i, 0)),   # x (residual)
                pl.BlockSpec((1, C), lambda i, k: (0, 0)),    # bias
            ],
            out_specs=pl.BlockSpec((tm, C), lambda i, k: (i, 0)),
            scratch_shapes=[pltpu.VMEM((tm, C), jnp.float32)],
        ),
        compiler_params=pltpu.CompilerParams(
            dimension_semantics=("parallel", "arbitrary")),
    )(a_bf16, hw, x, b2)
    return out


# ----------------------------------------------------------------------------
# Pure-JAX f32 reference
# ----------------------------------------------------------------------------
def _reference(x, a_hat, w, b, gamma, beta):
    mean = jnp.mean(x, axis=-1, keepdims=True)
    var = jnp.mean((x - mean) ** 2, axis=-1, keepdims=True)
    h = (x - mean) * jax.lax.rsqrt(var + 1e-5) * gamma + beta
    h = jnp.maximum(h, 0.0)
    h = a_hat @ (h @ w) + b
    return x + h


if __name__ == "__main__":
    # Small synthetic graph; C chosen lane-dense (multiple of 128).
    N, C = 256, 128
    key = jax.random.PRNGKey(0)
    kx, kw, kb = jax.random.split(key, 3)

    x = jax.random.normal(kx, (N, C), dtype=jnp.float32)

    # GCNConv parameters (glorot-ish deterministic init)
    w = jax.random.normal(kw, (C, C), dtype=jnp.float32) * (1.0 / jnp.sqrt(C))
    b = jax.random.normal(kb, (C,), dtype=jnp.float32) * 0.01

    # LayerNorm affine parameters
    gamma = jnp.ones((C,), dtype=jnp.float32)
    beta = jnp.zeros((C,), dtype=jnp.float32)

    # Ring graph + self loops, symmetric GCN normalization:
    # A_hat = D^{-1/2} (A + I) D^{-1/2}
    idx = jnp.arange(N)
    adj = jnp.zeros((N, N), dtype=jnp.float32)
    adj = adj.at[idx, (idx + 1) % N].set(1.0)
    adj = adj.at[(idx + 1) % N, idx].set(1.0)
    adj = adj + jnp.eye(N, dtype=jnp.float32)
    deg = jnp.sum(adj, axis=1)
    dinv = 1.0 / jnp.sqrt(deg)
    a_hat = adj * dinv[:, None] * dinv[None, :]

    # tm=tk=128 so the test exercises multiple row tiles AND multiple
    # reduction tiles (2x2 grid) of the pipelined aggregation.
    out = deepgcn_layer(x, a_hat, w, b, gamma, beta, tm=128, tk=128)
    out = jax.block_until_ready(out)

    ref = _reference(x, a_hat, w, b.reshape(1, C),
                     gamma.reshape(1, C), beta.reshape(1, C))
    assert out.shape == (N, C)
    # Tolerance loosened vs the pure-f32 reference because A_hat and HW are
    # intentionally carried in bf16 (f32 accumulation) per the perf review.
    assert jnp.allclose(out, ref, atol=5e-2, rtol=5e-2), (
        float(jnp.max(jnp.abs(out - ref))))
    print("KERNEL_OK")
</pallas_src>

<mosaic_0001>
module attributes {stable_mosaic.version = 11 : i64} {
  func.func @_ln_relu_linear_kernel(%arg0: i32, %arg1: memref<128x128xf32, #tpu.memory_space<vmem>>, %arg2: memref<128x128xf32, #tpu.memory_space<vmem>>, %arg3: memref<1x128xf32, #tpu.memory_space<vmem>>, %arg4: memref<1x128xf32, #tpu.memory_space<vmem>>, %arg5: memref<128x128xbf16, #tpu.memory_space<vmem>>) attributes {dimension_semantics = [#tpu.dimension_semantics<parallel>], iteration_bounds = array<i64: 2>, scalar_prefetch = 0 : i64, scratch_operands = 0 : i64, tpu.core_type = #tpu.core_type<tc>, window_params = [{transform_indices = @transform_0, window_bounds = array<i64: 128, 128>}, {pipeline_mode = #tpu.pipeline_mode<synchronous>, transform_indices = @transform_1, window_bounds = array<i64: 128, 128>}, {pipeline_mode = #tpu.pipeline_mode<synchronous>, transform_indices = @transform_2, window_bounds = array<i64: 1, 128>}, {pipeline_mode = #tpu.pipeline_mode<synchronous>, transform_indices = @transform_3, window_bounds = array<i64: 1, 128>}, {transform_indices = @transform_4, window_bounds = array<i64: 128, 128>}]} {
    %c0 = arith.constant 0 : index
    %c0_0 = arith.constant 0 : index
    %0 = vector.load %arg1[%c0, %c0_0] : memref<128x128xf32, #tpu.memory_space<vmem>>, vector<128x128xf32>
    %c0_1 = arith.constant 0 : index
    %c0_2 = arith.constant 0 : index
    %1 = vector.load %arg3[%c0_1, %c0_2] : memref<1x128xf32, #tpu.memory_space<vmem>>, vector<1x128xf32>
    %c0_3 = arith.constant 0 : index
    %c0_4 = arith.constant 0 : index
    %2 = vector.load %arg4[%c0_3, %c0_4] : memref<1x128xf32, #tpu.memory_space<vmem>>, vector<1x128xf32>
    %cst = arith.constant dense<0.000000e+00> : vector<128xf32>
    %3 = vector.multi_reduction <add>, %0, %cst [1] : vector<128x128xf32> to vector<128xf32>
    %4 = vector.shape_cast %3 : vector<128xf32> to vector<128x1xf32>
    %cst_5 = arith.constant 1.280000e+02 : f32
    %5 = vector.broadcast %cst_5 : f32 to vector<128x1xf32>
    %6 = arith.divf %4, %5 : vector<128x1xf32>
    %7 = vector.broadcast %6 : vector<128x1xf32> to vector<128x128xf32>
    %8 = arith.subf %0, %7 : vector<128x128xf32>
    %9 = arith.mulf %8, %8 : vector<128x128xf32>
    %cst_6 = arith.constant dense<0.000000e+00> : vector<128xf32>
    %10 = vector.multi_reduction <add>, %9, %cst_6 [1] : vector<128x128xf32> to vector<128xf32>
    %11 = vector.shape_cast %10 : vector<128xf32> to vector<128x1xf32>
    %cst_7 = arith.constant 1.280000e+02 : f32
    %12 = vector.broadcast %cst_7 : f32 to vector<128x1xf32>
    %13 = arith.divf %11, %12 : vector<128x1xf32>
    %cst_8 = arith.constant 9.99999974E-6 : f32
    %14 = vector.broadcast %cst_8 : f32 to vector<128x1xf32>
    %15 = arith.addf %13, %14 : vector<128x1xf32>
    %16 = math.rsqrt %15 : vector<128x1xf32>
    %17 = vector.broadcast %16 : vector<128x1xf32> to vector<128x128xf32>
    %18 = arith.mulf %8, %17 : vector<128x128xf32>
    %19 = vector.broadcast %1 : vector<1x128xf32> to vector<128x128xf32>
    %20 = arith.mulf %18, %19 : vector<128x128xf32>
    %21 = vector.broadcast %2 : vector<1x128xf32> to vector<128x128xf32>
    %22 = arith.addf %20, %21 : vector<128x128xf32>
    %cst_9 = arith.constant 0.000000e+00 : f32
    %23 = vector.broadcast %cst_9 : f32 to vector<128x128xf32>
    %24 = arith.maximumf %22, %23 : vector<128x128xf32>
    %c0_10 = arith.constant 0 : index
    %c0_11 = arith.constant 0 : index
    %25 = vector.load %arg2[%c0_10, %c0_11] : memref<128x128xf32, #tpu.memory_space<vmem>>, vector<128x128xf32>
    %cst_12 = arith.constant dense<0.000000e+00> : vector<128x128xf32>
    %26 = tpu.matmul %24, %25, %cst_12 {dimension_numbers = #tpu.dot_dimension_numbers<[1], [0], [0], [1], [0, 0, 1, 1], [], []>} : vector<128x128xf32>, vector<128x128xf32>, vector<128x128xf32> -> vector<128x128xf32>
    %27 = arith.truncf %26 : vector<128x128xf32> to vector<128x128xbf16>
    %c0_13 = arith.constant 0 : index
    %c0_14 = arith.constant 0 : index
    %28 = vector.load %arg5[%c0_13, %c0_14] : memref<128x128xbf16, #tpu.memory_space<vmem>>, vector<128x128xbf16>
    tpu.vector_store %arg5[%c0_13, %c0_14], %27 {strides = array<i32>} : memref<128x128xbf16, #tpu.memory_space<vmem>>, vector<128x128xbf16>,
    return
  }
  func.func @transform_0(%arg0: i32) -> (i32, i32) {
    %c0_i32 = arith.constant 0 : i32
    %c0_i32_0 = arith.constant 0 : i32
    return %arg0, %c0_i32 : i32, i32
  }
  func.func @transform_1(%arg0: i32) -> (i32, i32) {
    %c0_i32 = arith.constant 0 : i32
    %c0_i32_0 = arith.constant 0 : i32
    %c0_i32_1 = arith.constant 0 : i32
    return %c0_i32, %c0_i32_0 : i32, i32
  }
  func.func @transform_2(%arg0: i32) -> (i32, i32) {
    %c0_i32 = arith.constant 0 : i32
    %c0_i32_0 = arith.constant 0 : i32
    %c0_i32_1 = arith.constant 0 : i32
    return %c0_i32, %c0_i32_0 : i32, i32
  }
  func.func @transform_3(%arg0: i32) -> (i32, i32) {
    %c0_i32 = arith.constant 0 : i32
    %c0_i32_0 = arith.constant 0 : i32
    %c0_i32_1 = arith.constant 0 : i32
    return %c0_i32, %c0_i32_0 : i32, i32
  }
  func.func @transform_4(%arg0: i32) -> (i32, i32) {
    %c0_i32 = arith.constant 0 : i32
    %c0_i32_0 = arith.constant 0 : i32
    return %arg0, %c0_i32 : i32, i32
  }
}

</mosaic_0001>

<bundles_post_ra>
// kernel: tpu_custom_call.1
= control target key start
LH: loop header
LB: loop body
LE: loop exit
PB: predicated region body
PF: predicated region fallthrough
CT: control target
= control target key end

     0   :  { %9 = vsyncpa [#allocation3], 0  ;;  %s1906_s0 = inlined_call_operand.hbm [shape: f32[256,128], index: 0, kind: input, shape index: {}]   ;;  %s1907_s1 = inlined_call_operand.hbm [shape: f32[128,128], index: 1, kind: input, shape index: {}]   ;;  %s1908_s2 = inlined_call_operand.vmem [shape: f32[1,128], index: 2, kind: input, shape index: {}]   ;;  %s1909_s3 = inlined_call_operand.vmem [shape: f32[1,128], index: 3, kind: input, shape index: {}]   ;;  %s1910_s4 = inlined_call_operand.hbm [shape: bf16[256,128], index: 4, kind: output, shape index: {}]  }
   0x1   :  { %11 = vsyncpa [#allocation3 + $0x1], 0 }
   0x2   :  { %12 = vsyncpa [#allocation6], 0 }
   0x3   :  { %13 = vsyncpa [#allocation4], 0 }
   0x4   :  { %15 = vsyncpa [#allocation4 + $0x1], 0  ;;  %s1222_s15 = smov 0   ;;  %s1224_s16 = smov 0  }
   0x5   :  { %s1226_s17 = smov 0   ;;  %s1228_s18 = smov 0  }
   0x6 LB: > { %s1243_s19 = sadd.s32 4294967295, %s1189_s18   ;;  %s848_s20 = sadd.s32 4294967294, %s1189_s18   ;;  %s1189_s18 = sphi %s1228_s18, %s1944_s18   ;;  %s1185_s17 = sphi %s1226_s17, %s1943_s17   ;;  %s1181_s16 = sphi %s1224_s16, %s1942_s16   ;;  %s1177_s15 = sphi %s1222_s15, %s1941_s15  }
   0x7   : > { %p41_p0 = scmp.ne.s32.totalorder %s1181_s16, %s1177_s15  ;;  %p42_p1 = scmp.eq.s32.totalorder %s1243_s19, 0 }
   0x8   : > { %p128_p2 = scmp.eq.s32.totalorder %s1243_s19, 1  ;;  %p134_p3 = scmp.eq.s32.totalorder %s848_s20, 1 }
   0x9   : > { %p1252_p4 = por %p42_p1, %p41_p0  ;;  %p849_p5 = scmp.ge.s32.totalorder %s1189_s18, 1 }
   0xa   : > { %p1257_p6 = por %p134_p3, %p41_p0  ;;  %p141_p7 = scmp.lt.s32.totalorder %s1189_s18, 3 }
   0xb   : > { %s152_s25 = sshll.u32 %s1907_s1, 4  ;;  %s1191_s27 = smov [#allocation5]   ;;  %s153_s25 = int_to_ptr.hbm [resolvable:$true] %s152_s25 }
   0xc   : > { %p1265_p8 = pnand %p849_p5, %p141_p7  ;;  %s154_s28 = sshll.u32 %s1191_s27, 4  ;;  %s155_s28 = int_to_ptr.vmem [resolvable:$true] %s154_s28 }
   0xd   : > { %s1275_s29 = sadd.s32 1, %s1189_s18   ;;  %s1192_s30 = smov 128  }
   0xe   : > { %p969_p9 = pneg %p1265_p8  ;;  %s1193_s5 = smov 8  }
   0xf   : > { %s25_s6 = ssub.s32 %s1189_s18, %s1275_s29  ;;  %s28_s7 = sadd.s32 1, %s1185_s17 }
  0x10   : > { %p970_p10 = pnand %p969_p9, %p42_p1  ;;  %p26_p12 = scmp.eq.s32.totalorder %s25_s6, 0 }
  0x11   : > { %p35_p13 = scmp.ne.s32.totalorder %s1185_s17, %s1181_s16  ;;  %p36_p0 = scmp.eq.s32.totalorder %s1189_s18, 0 }
  0x12   : > { %972 = dma.hbm_to_vmem [thread:$0]  (!%p970_p10), %s153_s25, 2048, %s155_s28, [#allocation6], %s1192_s30, %s1192_s30, %s1193_s5  }
  0x13   : > { %s1287_s8 = scalar_select %p26_p12, %s1185_s17, %s28_s7  }
  0x14   : > { %p1291_p3 = por %p128_p2, %p35_p13  ;;  %p982_p5 = scmp.lt.s32.totalorder %s1189_s18, 2 }
  0x15   : > { %s174_s10 = sand.u32 1, %s1185_s17   ;;  %s864_s11 = sshll.u32 %s1189_s18, 7 }
  0x16   : > { %p37_p7 = por %p36_p0, %p35_p13  ;;  %s852_s12 = sshll.u32 %s174_s10, 7 }
  0x17   : > { %s183_s20 = scalar_lea.hbm %s1906_s0, %s864_s11  ;;  %s178_s24 = scalar_lea.vmem [#allocation2], %s852_s12 }
  0x18   : > { %s184_s23 = sshll.u32 %s183_s20, 4  ;;  %s186_s25 = sshll.u32 %s178_s24, 4  ;;  %s185_s23 = int_to_ptr.hbm [resolvable:$true] %s184_s23  ;;  %s187_s25 = int_to_ptr.vmem [resolvable:$true] %s186_s25 }
  0x19   : > { %p1301_p9 = pnand %p982_p5, %p37_p7  ;;  %s175_s28 = scalar_lea.sflag [#allocation3], %s174_s10 }
  0x1a   : > { %s1089_s6 = sshra.s32 %s185_s23, 4  ;;  %s1096_s12 = scalar_lea.hbm %s1906_s0, 256  ;;  %s1090_s6 = int_to_ptr.hbm [resolvable:$true] %s1089_s6 }
  0x1b   : > { %s1091_s7 = scalar_lea.hbm %s1090_s6, 128  ;;  %p1093_p10 = pneg %p1301_p9 }
  0x1c   : > { %p1092_p2 = scmp.ne.s32.totalorder %s1090_s6, %s1091_s7  ;;  %p1097_p0 = scmp.lt.s32.totalorder %s1090_s6, %s1906_s0 }
  0x1d   : > { %p1098_p5 = scmp.lt.s32.totalorder %s1096_s12, %s1091_s7 }
  0x1e   : > { %p1094_p12 = pnand %p1093_p10, %p1092_p2 }
  0x1f   : > { %p1099_p7 = por %p1098_p5, %p1097_p0 }
  0x20   : > { %p1095_p13 = pneg %p1094_p12 }
  0x22   : > { %p1100_p11 = pnand %p1099_p7, %p1095_p13 }
  0x24   : > { %1103 = shalt.err (!%p1100_p11)
}
  0x25   : > { %976 = dma.hbm_to_vmem [thread:$0]  (!%p1301_p9), %s185_s23, 2048, %s187_s25, %s175_s28, %s1192_s30, %s1192_s30, %s1193_s5  }
  0x26   : > { %198 = sbr.rel (%p1265_p8) target bundleno = 501 (0x1f5), region = 36  ;;  %s1321_s10 = sand.u32 (!%p1265_p8), 1, %s1181_s16  }
  0x27   : > { %s856_s24 = sshll.u32 (!%p1265_p8), %s1321_s10, 7  ;;  %s201_s6 = scalar_lea.sflag (!%p1265_p8), [#allocation3], %s1321_s10 }
  0x28   : > { %s1325_s7 = scalar_lea.vmem (!%p1265_p8), [#allocation2], %s856_s24 }
  0x2b   : > { %1164 = dma.done.wait (%p1252_p4), %s201_s6, 2048  }
  0x2c   : > { %1166 = vsyncadd (%p1252_p4), %s201_s6, 4294965248 }
  0x2d   : > { %1168 = dma.done.wait (%p42_p1), [#allocation6], 2048  }
  0x2e   : > { %1170 = vsyncadd (%p42_p1), [#allocation6], 4294965248  ;;  %v1336_v0 = vld [vmem:[%s1325_s7 + $0x48] sm:$0xff]  ;;  %v245_v1 = vld [vmem:[%s1325_s7 + $0x40] sm:$0xff]  ;;  %v1194_v16 = vmov 128.0   ;;  %s858_s23 = sshll.u32 %s1321_s10, 6 }
  0x2f   : > { %v237_v2 = vld [vmem:[%s1325_s7] sm:$0xff]  ;;  %273 = vadd.xlane.f32.xlu2 %v1336_v0  ;;  %271 = vadd.xlane.f32.xlu0 %v245_v1  ;;  %v250_v3 = vld [vmem:[%s1325_s7 + $0x68] sm:$0xff]  ;;  %v1345_v6 = vld [vmem:[%s1325_s7 + $0x50] sm:$0xff]  ;;  %1025 = vrcp.f32 %v1194_v16  ;;  %s1862_s25 = scalar_lea.vmem [#allocation7], %s858_s23  ;;  %s865_s27 = sshll.u32 %s1243_s19, 6 }
  0x30   : > { %255 = vadd.xlane.f32.xlu1 %v237_v2  ;;  %v249_v4 = vld [vmem:[%s1325_s7 + $0x60] sm:$0xff]  ;;  %v1348_v7 = vld [vmem:[%s1325_s7 + $0x8] sm:$0xff]  ;;  %v1357_v9 = vld [vmem:[%s1325_s7 + $0x30] sm:$0xff]  ;;  %s761_s13 = scalar_lea.hbm %s1910_s4, %s865_s27  ;;  %s762_s12 = sshll.u32 %s1862_s25, 4  ;;  %s763_s12 = int_to_ptr.vmem [resolvable:$true] %s762_s12 }
  0x31   : > { %v241_v5 = vld [vmem:[%s1325_s7 + $0x20] sm:$0xff]  ;;  %v1351_v8 = vld [vmem:[%s1325_s7 + $0x28] sm:$0xff]  ;;  %v1360_v10 = vld [vmem:[%s1325_s7 + $0x70] sm:$0xff]  ;;  %s764_s14 = sshll.u32 %s761_s13, 4  ;;  %s750_s19 = scalar_lea.sflag [#allocation4], %s1321_s10  ;;  %s765_s14 = int_to_ptr.hbm [resolvable:$true] %s764_s14 }
  0x32   : > { %v1363_v11 = vld [vmem:[%s1325_s7 + $0x10] sm:$0xff]  ;;  %v1369_v12 = vld [vmem:[%s1325_s7 + $0x18] sm:$0xff]  ;;  %s1133_s20 = sshra.s32 %s765_s14, 4  ;;  %s1139_s21 = scalar_lea.hbm %s1910_s4, 128  ;;  %s1134_s20 = int_to_ptr.hbm [resolvable:$true] %s1133_s20 }
  0x33   : > { %v1372_v13 = vld [vmem:[%s1325_s7 + $0x58] sm:$0xff]  ;;  %s1135_s24 = scalar_lea.hbm %s1134_s20, 64  ;;  %p1140_p11 = scmp.lt.s32.totalorder %s1134_s20, %s1910_s4 }
  0x34   : > { %v1375_v14 = vld [vmem:[%s1325_s7 + $0x78] sm:$0xff]  ;;  %p1136_p1 = scmp.ne.s32.totalorder %s1134_s20, %s1135_s24  ;;  %p1141_p9 = scmp.lt.s32.totalorder %s1139_s21, %s1135_s24 }
  0x35   : > { %v1381_v15 = vld [vmem:[%s1325_s7 + $0x38] sm:$0xff]  ;;  %v1026_v17 = vpop.eup %1025 }
  0x36   : > { %v288_v18 = vmul.f32 128.0, %v1026_v17  ;;  %vm292_vm0 = vweird.f32 %v1026_v17  ;;  %v651_v47 = vld [vmem:[#allocation5 + $0x78] sm:$0xff]  ;;  %p1137_p4 = pnand %p1136_p1, %p1291_p3  ;;  %p1142_p2 = por %p1141_p9, %p1140_p11 }
  0x37   : > { %281 = vadd.xlane.f32.xlu2 %v250_v3  ;;  %279 = vadd.xlane.f32.xlu0 %v249_v4 }
  0x38   : > { %263 = vadd.xlane.f32.xlu1 %v241_v5  ;;  %v289_v19 = vsub.f32 1.0, %v288_v18  ;;  %652 = vmatpush.msra.mxu0 %v651_v47  ;;  %p1138_p8 = pneg %p1137_p4 }
  0x39   : > { %914 = vmatpush.msra.mxu2 %v651_v47  ;;  %913 = vmatpush.msra.mxu1 %v651_v47 }
  0x3a   : > { %v290_v20 = vmul.f32 %v1026_v17, %v289_v19  ;;  %915 = vmatpush.msra.mxu3 %v651_v47  ;;  %v636_v47 = vld [vmem:[#allocation5] sm:$0xff]  ;;  %p1143_p10 = pnand %p1142_p2, %p1138_p8 }
  0x3c   : > { %v291_v21 = vadd.f32 %v1026_v17, %v290_v20 }
  0x3e   : > { %v1384_v22 = vsel %vm292_vm0, %v1026_v17, %v291_v21 }
  0x3f   : > { %275 = vadd.xlane.f32.xlu2 %v1345_v6  ;;  %257 = vadd.xlane.f32.xlu0 %v1348_v7 }
  0x40   : > { %265 = vadd.xlane.f32.xlu1 %v1351_v8 }
  0x47   : > { %267 = vadd.xlane.f32.xlu2 %v1357_v9  ;;  %283 = vadd.xlane.f32.xlu0 %v1360_v10 }
  0x48   : > { %259 = vadd.xlane.f32.xlu1 %v1363_v11 }
  0x4f   : > { %261 = vadd.xlane.f32.xlu2 %v1369_v12  ;;  %277 = vadd.xlane.f32.xlu0 %v1372_v13 }
  0x50   : > { %285 = vadd.xlane.f32.xlu1 %v1375_v14 }
  0x57   : > { %269 = vadd.xlane.f32.xlu0 %v1381_v15 }
  0xa2   : > { %v274_v23 = vpop.xlane.xlu2 %273  ;;  %v272_v24 = vpop.xlane.xlu0 %271 }
  0xa3   : > { %v302_v25 = vmul.f32 %v1384_v22, %v272_v24  ;;  %v256_v26 = vpop.xlane.xlu1 %255  ;;  %v303_v41 = vmul.f32 %v1384_v22, %v274_v23 }
  0xa4   : > { %v294_v27 = vmul.f32 %v1384_v22, %v256_v26 }
  0xa5   : > { %v1388_v28 = vsub.f32 %v245_v1, %v302_v25  ;;  %v1413_v48 = vsub.f32 %v1336_v0, %v303_v41  ;;  %v639_v41 = vld [vmem:[#allocation5 + $0x18] sm:$0xff] }
  0xa6   : > { %v1390_v29 = vsub.f32 %v237_v2, %v294_v27  ;;  %v650_v27 = vld [vmem:[#allocation5 + $0x70] sm:$0xff] }
  0xa7   : > { %v334_v30 = vmul.f32 %v1388_v28, %v1388_v28  ;;  %v335_v55 = vmul.f32 %v1413_v48, %v1413_v48  ;;  %653 = vmatpush.msra.mxu0 %v650_v27  ;;  %917 = vmatpush.msra.mxu2 %v650_v27 }
  0xa8   : > { %v326_v31 = vmul.f32 %v1390_v29, %v1390_v29  ;;  %916 = vmatpush.msra.mxu1 %v650_v27  ;;  %918 = vmatpush.msra.mxu3 %v650_v27 }
  0xa9   : > { %358 = vadd.xlane.f32.xlu1 %v334_v30  ;;  %v648_v30 = vld [vmem:[#allocation5 + $0x60] sm:$0xff] }
  0xaa   : > { %342 = vadd.xlane.f32.xlu0 %v326_v31  ;;  %v282_v32 = vpop.xlane.xlu2 %281  ;;  %v280_v33 = vpop.xlane.xlu0 %279  ;;  %v646_v31 = vld [vmem:[#allocation5 + $0x50] sm:$0xff] }
  0xab   : > { %v307_v34 = vmul.f32 %v1384_v22, %v282_v32  ;;  %v306_v35 = vmul.f32 %v1384_v22, %v280_v33  ;;  %v264_v36 = vpop.xlane.xlu1 %263  ;;  %v645_v32 = vld [vmem:[#allocation5 + $0x48] sm:$0xff]  ;;  %v644_v33 = vld [vmem:[#allocation5 + $0x40] sm:$0xff] }
  0xac   : > { %v298_v37 = vmul.f32 %v1384_v22, %v264_v36  ;;  %v641_v36 = vld [vmem:[#allocation5 + $0x28] sm:$0xff] }
  0xad   : > { %v1399_v38 = vsub.f32 %v250_v3, %v307_v34  ;;  %v1401_v39 = vsub.f32 %v249_v4, %v306_v35  ;;  %v643_v34 = vld [vmem:[#allocation5 + $0x38] sm:$0xff]  ;;  %v642_v35 = vld [vmem:[#allocation5 + $0x30] sm:$0xff] }
  0xae   : > { %v1403_v40 = vsub.f32 %v241_v5, %v298_v37  ;;  %v640_v37 = vld [vmem:[#allocation5 + $0x20] sm:$0xff] }
  0xaf   : > { %v338_v42 = vmul.f32 %v1401_v39, %v1401_v39  ;;  %v339_v43 = vmul.f32 %v1399_v38, %v1399_v38 }
  0xb0   : > { %v330_v44 = vmul.f32 %v1403_v40, %v1403_v40 }
  0xb1   : > { %366 = vadd.xlane.f32.xlu2 %v338_v42  ;;  %v638_v42 = vld [vmem:[#allocation5 + $0x10] sm:$0xff] }
  0xb2   : > { %368 = vadd.xlane.f32.xlu0 %v339_v43  ;;  %350 = vadd.xlane.f32.xlu1 %v330_v44  ;;  %v276_v45 = vpop.xlane.xlu2 %275  ;;  %v258_v46 = vpop.xlane.xlu0 %257  ;;  %v637_v43 = vld [vmem:[#allocation5 + $0x8] sm:$0xff] }
  0xb3   : > { %v304_v49 = vmul.f32 %v1384_v22, %v276_v45  ;;  %v295_v50 = vmul.f32 %v1384_v22, %v258_v46  ;;  %v266_v51 = vpop.xlane.xlu1 %265 }
  0xb4   : > { %v299_v54 = vmul.f32 %v1384_v22, %v266_v51 }
  0xb5   : > { %v1418_v52 = vsub.f32 %v1345_v6, %v304_v49  ;;  %v1421_v53 = vsub.f32 %v1348_v7, %v295_v50 }
  0xb6   : > { %v1431_v58 = vsub.f32 %v1351_v8, %v299_v54 }
  0xb7   : > { %v336_v56 = vmul.f32 %v1418_v52, %v1418_v52  ;;  %v327_v57 = vmul.f32 %v1421_v53, %v1421_v53 }
  0xb8   : > { %v331_v2 = vmul.f32 %v1431_v58, %v1431_v58 }
  0xb9   : > { %360 = vadd.xlane.f32.xlu2 %v335_v55 }
  0xba   : > { %362 = vadd.xlane.f32.xlu0 %v336_v56  ;;  %344 = vadd.xlane.f32.xlu1 %v327_v57  ;;  %v268_v59 = vpop.xlane.xlu2 %267  ;;  %v284_v60 = vpop.xlane.xlu0 %283 }
  0xbb   : > { %v300_v61 = vmul.f32 %v1384_v22, %v268_v59  ;;  %v308_v62 = vmul.f32 %v1384_v22, %v284_v60  ;;  %v260_v63 = vpop.xlane.xlu1 %259 }
  0xbc   : > { %v296_v3 = vmul.f32 %v1384_v22, %v260_v63 }
  0xbd   : > { %v1436_v0 = vsub.f32 %v1357_v9, %v300_v61  ;;  %v1439_v1 = vsub.f32 %v1360_v10, %v308_v62 }
  0xbe   : > { %v1449_v6 = vsub.f32 %v1363_v11, %v296_v3 }
  0xbf   : > { %v332_v4 = vmul.f32 %v1436_v0, %v1436_v0  ;;  %v340_v5 = vmul.f32 %v1439_v1, %v1439_v1 }
  0xc0   : > { %v328_v19 = vmul.f32 %v1449_v6, %v1449_v6 }
  0xc1   : > { %352 = vadd.xlane.f32.xlu2 %v331_v2 }
  0xc2   : > { %354 = vadd.xlane.f32.xlu0 %v332_v4  ;;  %370 = vadd.xlane.f32.xlu1 %v340_v5  ;;  %v262_v7 = vpop.xlane.xlu2 %261  ;;  %v278_v8 = vpop.xlane.xlu0 %277 }
  0xc3   : > { %v297_v9 = vmul.f32 %v1384_v22, %v262_v7  ;;  %v305_v10 = vmul.f32 %v1384_v22, %v278_v8  ;;  %v286_v16 = vpop.xlane.xlu1 %285 }
  0xc4   : > { %v309_v11 = vmul.f32 %v1384_v22, %v286_v16 }
  0xc5   : > { %v1454_v17 = vsub.f32 %v1369_v12, %v297_v9  ;;  %v1457_v18 = vsub.f32 %v1372_v13, %v305_v10 }
  0xc6   : > { %v1467_v23 = vsub.f32 %v1375_v14, %v309_v11  ;;  %v649_v14 = vld [vmem:[#allocation5 + $0x68] sm:$0xff] }
  0xc7   : > { %v329_v20 = vmul.f32 %v1454_v17, %v1454_v17  ;;  %v337_v21 = vmul.f32 %v1457_v18, %v1457_v18  ;;  %654 = vmatpush.msra.mxu0 %v649_v14  ;;  %920 = vmatpush.msra.mxu2 %v649_v14 }
  0xc8   : > { %v341_v25 = vmul.f32 %v1467_v23, %v1467_v23  ;;  %919 = vmatpush.msra.mxu1 %v649_v14  ;;  %921 = vmatpush.msra.mxu3 %v649_v14 }
  0xc9   : > { %346 = vadd.xlane.f32.xlu2 %v328_v19  ;;  %655 = vmatpush.msra.mxu0 %v648_v30 }
  0xca   : > { %348 = vadd.xlane.f32.xlu0 %v329_v20  ;;  %364 = vadd.xlane.f32.xlu1 %v337_v21  ;;  %v270_v12 = vpop.xlane.xlu0 %269 }
  0xcb   : > { %v301_v13 = vmul.f32 %v1384_v22, %v270_v12  ;;  %923 = vmatpush.msra.mxu2 %v648_v30  ;;  %922 = vmatpush.msra.mxu1 %v648_v30 }
  0xcc   : > { %924 = vmatpush.msra.mxu3 %v648_v30 }
  0xcd   : > { %v1471_v24 = vsub.f32 %v1381_v15, %v301_v13  ;;  %v647_v15 = vld [vmem:[#allocation5 + $0x58] sm:$0xff] }
  0xce   : > { %656 = vmatpush.msra.mxu0 %v647_v15  ;;  %926 = vmatpush.msra.mxu2 %v647_v15 }
  0xcf   : > { %v333_v26 = vmul.f32 %v1471_v24, %v1471_v24  ;;  %925 = vmatpush.msra.mxu1 %v647_v15  ;;  %927 = vmatpush.msra.mxu3 %v647_v15 }
  0xd0   : > { %657 = vmatpush.msra.mxu0 %v646_v31  ;;  %929 = vmatpush.msra.mxu2 %v646_v31 }
  0xd1   : > { %372 = vadd.xlane.f32.xlu2 %v341_v25  ;;  %928 = vmatpush.msra.mxu1 %v646_v31 }
  0xd2   : > { %356 = vadd.xlane.f32.xlu1 %v333_v26  ;;  %930 = vmatpush.msra.mxu3 %v646_v31 }
  0xd3   : > { %658 = vmatpush.msra.mxu0 %v645_v32  ;;  %932 = vmatpush.msra.mxu2 %v645_v32 }
  0xd4   : > { %931 = vmatpush.msra.mxu1 %v645_v32  ;;  %933 = vmatpush.msra.mxu3 %v645_v32 }
  0xd5   : > { %659 = vmatpush.msra.mxu0 %v644_v33  ;;  %935 = vmatpush.msra.mxu2 %v644_v33 }
  0xd6   : > { %934 = vmatpush.msra.mxu1 %v644_v33  ;;  %936 = vmatpush.msra.mxu3 %v644_v33 }
  0xd7   : > { %660 = vmatpush.msra.mxu0 %v643_v34  ;;  %938 = vmatpush.msra.mxu2 %v643_v34 }
  0xd8   : > { %937 = vmatpush.msra.mxu1 %v643_v34  ;;  %939 = vmatpush.msra.mxu3 %v643_v34 }
  0xd9   : > { %661 = vmatpush.msra.mxu0 %v642_v35  ;;  %941 = vmatpush.msra.mxu2 %v642_v35 }
  0xda   : > { %940 = vmatpush.msra.mxu1 %v642_v35  ;;  %942 = vmatpush.msra.mxu3 %v642_v35 }
  0xdb   : > { %662 = vmatpush.msra.mxu0 %v641_v36  ;;  %944 = vmatpush.msra.mxu2 %v641_v36 }
  0xdc   : > { %943 = vmatpush.msra.mxu1 %v641_v36  ;;  %945 = vmatpush.msra.mxu3 %v641_v36 }
  0xdd   : > { %663 = vmatpush.msra.mxu0 %v640_v37  ;;  %947 = vmatpush.msra.mxu2 %v640_v37 }
  0xde   : > { %946 = vmatpush.msra.mxu1 %v640_v37  ;;  %948 = vmatpush.msra.mxu3 %v640_v37 }
  0xdf   : > { %664 = vmatpush.msra.mxu0 %v639_v41  ;;  %950 = vmatpush.msra.mxu2 %v639_v41 }
  0xe0   : > { %949 = vmatpush.msra.mxu1 %v639_v41  ;;  %951 = vmatpush.msra.mxu3 %v639_v41 }
  0xe1   : > { %665 = vmatpush.msra.mxu0 %v638_v42  ;;  %953 = vmatpush.msra.mxu2 %v638_v42 }
  0xe2   : > { %952 = vmatpush.msra.mxu1 %v638_v42  ;;  %954 = vmatpush.msra.mxu3 %v638_v42 }
  0xe3   : > { %666 = vmatpush.msra.mxu0 %v637_v43  ;;  %956 = vmatpush.msra.mxu2 %v637_v43 }
  0xe4   : > { %955 = vmatpush.msra.mxu1 %v637_v43  ;;  %957 = vmatpush.msra.mxu3 %v637_v43 }
  0xe5   : > { %667 = vmatpush.msra.mxu0 %v636_v47  ;;  %959 = vmatpush.msra.mxu2 %v636_v47 }
  0xe6   : > { %958 = vmatpush.msra.mxu1 %v636_v47  ;;  %960 = vmatpush.msra.mxu3 %v636_v47 }
 0x11c   : > { %v359_v44 = vpop.xlane.xlu1 %358 }
 0x11d   : > { %v343_v45 = vpop.xlane.xlu0 %342  ;;  %v382_v46 = vmul.f32 %v359_v44, %v1384_v22 }
 0x11e   : > { %v374_v49 = vmul.f32 %v343_v45, %v1384_v22 }
 0x11f   : > { %v398_v50 = vadd.f32 1e-05, %v382_v46 }
 0x120   : > { %v390_v51 = vadd.f32 1e-05, %v374_v49 }
 0x121   : > { %1027 = vrsqrt.f32 %v398_v50  ;;  %vm492_vm5 = vweird.f32 %v398_v50 }
 0x122   : > { %1029 = vrsqrt.f32 %v390_v51  ;;  %vm412_vm1 = vweird.f32 %v390_v51 }
 0x124   : > { %v367_v54 = vpop.xlane.xlu2 %366 }
 0x125   : > { %v386_v55 = vmul.f32 %v367_v54, %v1384_v22  ;;  %v369_v56 = vpop.xlane.xlu0 %368  ;;  %v351_v57 = vpop.xlane.xlu1 %350 }
 0x126   : > { %v387_v59 = vmul.f32 %v369_v56, %v1384_v22  ;;  %v378_v60 = vmul.f32 %v351_v57, %v1384_v22 }
 0x127   : > { %v1482_v61 = vpop.eup %1027  ;;  %v1484_v62 = vadd.f32 1e-05, %v386_v55 }
 0x128   : > { %v1030_v63 = vpop.eup %1029  ;;  %v487_v2 = vmul.f32 %v1482_v61, %v398_v50  ;;  %v1487_v3 = vadd.f32 1e-05, %v387_v59  ;;  %v1489_v4 = vadd.f32 1e-05, %v378_v60  ;;  %vm493_vm3 = vweird.f32 %v1482_v61  ;;  %v1548_v60 = vld [vmem:[%s1908_s2] ss:$0 sm:$0xff] }
 0x129   : > { %v407_v5 = vmul.f32 %v1030_v63, %v390_v51  ;;  %1031 = vrsqrt.f32 %v1484_v62  ;;  %vm413_vm2 = vweird.f32 %v1030_v63  ;;  %vm1527_vm6 = vmor %vm492_vm5, %vm493_vm3  ;;  %vm532_vm8 = vweird.f32 %v1484_v62 }
 0x12a   : > { %v488_v7 = vmul.f32 %v1482_v61, %v487_v2  ;;  %1033 = vrsqrt.f32 %v1487_v3  ;;  %vm1517_vm4 = vmor %vm412_vm1, %vm413_vm2  ;;  %vm452_vm7 = vweird.f32 %v1489_v4  ;;  %vm542_vm12 = vweird.f32 %v1487_v3 }
 0x12b   : > { %v408_v8 = vmul.f32 %v1030_v63, %v407_v5  ;;  %1035 = vrsqrt.f32 %v1489_v4 }
 0x12c   : > { %v489_v9 = vmul.f32 0.5, %v488_v7  ;;  %v361_v10 = vpop.xlane.xlu2 %360  ;;  %v1560_v7 = vld [vmem:[%s1909_s3] ss:$0 sm:$0xff] }
 0x12d   : > { %v409_v16 = vmul.f32 0.5, %v408_v8  ;;  %v383_v19 = vmul.f32 %v361_v10, %v1384_v22  ;;  %v363_v11 = vpop.xlane.xlu0 %362  ;;  %v345_v20 = vpop.xlane.xlu1 %344 }
 0x12e   : > { %v490_v21 = vsub.f32 1.5, %v489_v9  ;;  %v384_v12 = vmul.f32 %v363_v11, %v1384_v22  ;;  %v375_v27 = vmul.f32 %v345_v20, %v1384_v22 }
 0x12f   : > { %v1497_v13 = vpop.eup %1031  ;;  %v410_v25 = vsub.f32 1.5, %v409_v16  ;;  %v1499_v26 = vadd.f32 1e-05, %v383_v19 }
 0x130   : > { %v1502_v14 = vpop.eup %1033  ;;  %v1504_v30 = vadd.f32 1e-05, %v384_v12  ;;  %v491_v32 = vmul.f32 %v1482_v61, %v490_v21  ;;  %v527_v33 = vmul.f32 %v1497_v13, %v1484_v62  ;;  %v1522_v37 = vadd.f32 1e-05, %v375_v27 }
 0x131   : > { %v1506_v15 = vpop.eup %1035  ;;  %v411_v31 = vmul.f32 %v1030_v63, %v410_v25  ;;  %1037 = vrsqrt.f32 %v1499_v26  ;;  %v537_v34 = vmul.f32 %v1502_v14, %v1487_v3  ;;  %vm533_vm9 = vweird.f32 %v1497_v13 }
 0x132   : > { %v447_v35 = vmul.f32 %v1506_v15, %v1489_v4  ;;  %1039 = vrsqrt.f32 %v1504_v30  ;;  %v528_v49 = vmul.f32 %v1497_v13, %v527_v33  ;;  %v495_v54 = vsel %vm1527_vm6, %v1482_v61, %v491_v32 }
 0x133   : > { %v415_v43 = vsel %vm1517_vm4, %v1030_v63, %v411_v31  ;;  %1041 = vrsqrt.f32 %v1522_v37  ;;  %v538_v50 = vmul.f32 %v1502_v14, %v537_v34  ;;  %vm453_vm10 = vweird.f32 %v1506_v15  ;;  %vm534_vm4 = vmor %vm532_vm8, %vm533_vm9 }
 0x134   : > { %v448_v41 = vmul.f32 %v1506_v15, %v447_v35  ;;  %v353_v42 = vpop.xlane.xlu2 %352  ;;  %v566_v59 = vmul.f32 %v415_v43, %v1390_v29  ;;  %v574_v29 = vmul.f32 %v495_v54, %v1388_v28  ;;  %v529_v8 = vmul.f32 0.5, %v528_v49  ;;  %vm454_vm1 = vmor %vm452_vm7, %vm453_vm10 }
 0x135   : > { %v355_v45 = vpop.xlane.xlu0 %354  ;;  %v379_v46 = vmul.f32 %v353_v42, %v1384_v22  ;;  %v371_v47 = vpop.xlane.xlu1 %370  ;;  %v539_v9 = vmul.f32 0.5, %v538_v50  ;;  %vm422_vm11 = vweird.f32 %v1522_v37  ;;  %vm543_vm13 = vweird.f32 %v1502_v14 }
 0x136   : > { %v380_v51 = vmul.f32 %v355_v45, %v1384_v22  ;;  %v388_v57 = vmul.f32 %v371_v47, %v1384_v22  ;;  %v449_v63 = vmul.f32 0.5, %v448_v41  ;;  %v585_v20 = vmul.f32 %v1548_v60, %v566_v59 }
 0x137   : > { %v1539_v55 = vpop.eup %1037  ;;  %v1541_v56 = vadd.f32 1e-05, %v379_v46  ;;  %v593_v31 = vmul.f32 %v1548_v60, %v574_v29  ;;  %v530_v34 = vsub.f32 1.5, %v529_v8  ;;  %v540_v35 = vsub.f32 1.5, %v539_v9 }
 0x138   : > { %v497_v2 = vmul.f32 %v1539_v55, %v1499_v26  ;;  %v1552_v5 = vpop.eup %1039  ;;  %v1554_v61 = vadd.f32 1e-05, %v380_v51  ;;  %v1570_v11 = vadd.f32 1e-05, %v388_v57  ;;  %v450_v28 = vsub.f32 1.5, %v449_v63 }
 0x139   : > { %1043 = vrsqrt.f32 %v1541_v56  ;;  %v507_v10 = vmul.f32 %v1552_v5, %v1504_v30  ;;  %v1566_v16 = vpop.eup %1041  ;;  %v604_v27 = vadd.f32 %v1560_v7, %v585_v20  ;;  %v612_v45 = vadd.f32 %v1560_v7, %v593_v31 }
 0x13a   : > { %v498_v19 = vmul.f32 %v1539_v55, %v497_v2  ;;  %1045 = vrsqrt.f32 %v1554_v61  ;;  %v417_v12 = vmul.f32 %v1566_v16, %v1522_v37  ;;  %v451_v47 = vmul.f32 %v1506_v15, %v450_v28 }
 0x13b   : > { %v508_v21 = vmul.f32 %v1552_v5, %v507_v10  ;;  %1047 = vrsqrt.f32 %v1570_v11  ;;  %v620_v44 = vmax.f32 %v604_v27, 0.0  ;;  %v628_v57 = vmax.f32 %v612_v45, 0.0 }
 0x13c   : > { %v347_v25 = vpop.xlane.xlu2 %346  ;;  %v418_v36 = vmul.f32 %v1566_v16, %v417_v12  ;;  %v499_v43 = vmul.f32 0.5, %v498_v19  ;;  %v531_v29 = vmul.f32 %v1497_v13, %v530_v34  ;;  %v1603_v8 = vmul.f32 %v1502_v14, %v540_v35 }
 0x13d   : > { %v349_v32 = vpop.xlane.xlu0 %348  ;;  %v365_v33 = vpop.xlane.xlu1 %364  ;;  %v376_v46 = vmul.f32 %v347_v25, %v1384_v22  ;;  %v509_v49 = vmul.f32 0.5, %v508_v21  ;;  %668 = vmatmul.f32.vlgmr.msra.gmra.mxu0 %v620_v44  ;;  %vm503_vm14 = vweird.f32 %v1539_v55  ;;  %vm512_vm15 = vweird.f32 %v1504_v30  ;;  %692 = vmatmul.f32.vlgmr.msra.gmra.mxu2 %v628_v57 }
 0x13e   : > { %v377_v41 = vmul.f32 %v349_v32, %v1384_v22  ;;  %v419_v50 = vmul.f32 0.5, %v418_v36  ;;  %v385_v2 = vmul.f32 %v365_v33, %v1384_v22  ;;  %v500_v19 = vsub.f32 1.5, %v499_v43 }
 0x13f   : > { %v1584_v42 = vpop.eup %1043  ;;  %v1598_v63 = vadd.f32 1e-05, %v376_v46  ;;  %vm513_vm0 = vweird.f32 %v1552_v5  ;;  %vm502_vm2 = vweird.f32 %v1499_v26  ;;  %v510_v21 = vsub.f32 1.5, %v509_v49 }
 0x140   : > { %v457_v51 = vmul.f32 %v1584_v42, %v1541_v56  ;;  %v1592_v54 = vpop.eup %1045  ;;  %v1596_v59 = vadd.f32 1e-05, %v377_v41  ;;  %v420_v20 = vsub.f32 1.5, %v419_v50  ;;  %vm423_vm3 = vweird.f32 %v1566_v16 }
 0x141   : > { %v467_v9 = vmul.f32 %v1592_v54, %v1554_v61  ;;  %v1608_v10 = vpop.eup %1047  ;;  %v1628_v4 = vadd.f32 1e-05, %v385_v2  ;;  %v455_v31 = vsel %vm454_vm1, %v1506_v15, %v451_v47  ;;  %v535_v36 = vsel %vm534_vm4, %v1497_v13, %v531_v29  ;;  %vm1657_vm9 = vmor %vm422_vm11, %vm423_vm3 }
 0x142   : > { %v458_v28 = vmul.f32 %v1584_v42, %v457_v51  ;;  %1049 = vrsqrt.f32 %v1596_v59  ;;  %v547_v25 = vmul.f32 %v1608_v10, %v1570_v11  ;;  %v570_v35 = vmul.f32 %v455_v31, %v1403_v40  ;;  %vm1673_vm11 = vmor %vm542_vm12, %vm543_vm13 }
 0x143   : > { %v468_v12 = vmul.f32 %v1592_v54, %v467_v9  ;;  %1051 = vrsqrt.f32 %v1598_v63  ;;  %v501_v43 = vmul.f32 %v1539_v55, %v500_v19  ;;  %v421_v62 = vmul.f32 %v1566_v16, %v420_v20  ;;  %vm1690_vm12 = vmor %vm502_vm2, %vm503_vm14 }
 0x144   : > { %v459_v27 = vmul.f32 0.5, %v458_v28  ;;  %v373_v32 = vpop.xlane.xlu2 %372  ;;  %v548_v34 = vmul.f32 %v1608_v10, %v547_v25  ;;  %vm462_vm5 = vweird.f32 %v1541_v56  ;;  %1053 = vrsqrt.f32 %v1628_v4  ;;  %vm1702_vm13 = vmor %vm512_vm15, %vm513_vm0 }
 0x145   : > { %v469_v33 = vmul.f32 0.5, %v468_v12  ;;  %v357_v41 = vpop.xlane.xlu1 %356  ;;  %v578_v44 = vmul.f32 %v535_v36, %v1401_v39  ;;  %v589_v46 = vmul.f32 %v1548_v60, %v570_v35  ;;  %v389_v47 = vmul.f32 %v373_v32, %v1384_v22 }
 0x146   : > { %v460_v15 = vsub.f32 1.5, %v459_v27  ;;  %v549_v45 = vmul.f32 0.5, %v548_v34  ;;  %vm463_vm6 = vweird.f32 %v1584_v42  ;;  %v381_v50 = vmul.f32 %v357_v41, %v1384_v22 }
 0x147   : > { %v470_v13 = vsub.f32 1.5, %v469_v33  ;;  %v597_v49 = vmul.f32 %v1548_v60, %v578_v44  ;;  %v511_v51 = vmul.f32 %v1552_v5, %v510_v21  ;;  %vm472_vm7 = vweird.f32 %v1554_v61  ;;  %vm1726_vm4 = vmor %vm462_vm5, %vm463_vm6 }
 0x148   : > { %v1641_v40 = vpop.eup %1049  ;;  %vm473_vm8 = vweird.f32 %v1592_v54  ;;  %v550_v39 = vsub.f32 1.5, %v549_v45  ;;  %vm552_vm10 = vweird.f32 %v1570_v11  ;;  %vm553_vm1 = vweird.f32 %v1608_v10 }
 0x149   : > { %v437_v57 = vmul.f32 %v1641_v40, %v1596_v59  ;;  %v1651_v2 = vpop.eup %1051  ;;  %v608_v22 = vadd.f32 %v1560_v7, %v589_v46  ;;  %v616_v9 = vadd.f32 %v1560_v7, %v597_v49  ;;  %v1665_v19 = vadd.f32 1e-05, %v389_v47 }
 0x14a   : > { %v1667_v20 = vadd.f32 1e-05, %v381_v50  ;;  %v461_v28 = vmul.f32 %v1584_v42, %v460_v15  ;;  %v427_v12 = vmul.f32 %v1651_v2, %v1598_v63  ;;  %v425_v25 = vsel %vm1657_vm9, %v1566_v16, %v421_v62  ;;  %v1684_v27 = vpop.eup %1053  ;;  %vm1762_vm9 = vmor %vm472_vm7, %vm473_vm8 }
 0x14b   : > { %v438_v21 = vmul.f32 %v1641_v40, %v437_v57  ;;  %v1695_v31 = vmul.f32 %v1592_v54, %v470_v13  ;;  %v624_v32 = vmax.f32 %v608_v22, 0.0  ;;  %v632_v33 = vmax.f32 %v616_v9, 0.0 }
 0x14c   : > { %1055 = vrsqrt.f32 %v1665_v19  ;;  %v1707_v26 = vmul.f32 %v1608_v10, %v550_v39  ;;  %vm442_vm14 = vweird.f32 %v1596_v59  ;;  %vm443_vm2 = vweird.f32 %v1641_v40 }
 0x14d   : > { %v439_v34 = vmul.f32 0.5, %v438_v21  ;;  %v428_v35 = vmul.f32 %v1651_v2, %v427_v12  ;;  %vm432_vm3 = vweird.f32 %v1598_v63  ;;  %v517_v36 = vmul.f32 %v1684_v27, %v1628_v4  ;;  %680 = vmatmul.f32.vlgmr.msra.gmra.mxu1 %v624_v32  ;;  %704 = vmatmul.f32.vlgmr.msra.gmra.mxu3 %v632_v33 }
 0x14e   : > { %vm433_vm15 = vweird.f32 %v1651_v2  ;;  %vm522_vm0 = vweird.f32 %v1628_v4  ;;  %1057 = vrsqrt.f32 %v1667_v20  ;;  %v567_v30 = vmul.f32 %v425_v25, %v1421_v53 }
 0x14f   : > { %v505_v41 = vsel %vm1690_vm12, %v1539_v55, %v501_v43  ;;  %v440_v44 = vsub.f32 1.5, %v439_v34  ;;  %v429_v15 = vmul.f32 0.5, %v428_v35  ;;  %v518_v45 = vmul.f32 %v1684_v27, %v517_v36  ;;  %vm1786_vm8 = vmor %vm432_vm3, %vm433_vm15 }
 0x150   : > { %v575_v46 = vmul.f32 %v505_v41, %v1413_v48  ;;  %v586_v53 = vmul.f32 %v1548_v60, %v567_v30  ;;  %v545_v55 = vsel %vm1673_vm11, %v1502_v14, %v1603_v8  ;;  %v465_v56 = vsel %vm1726_vm4, %v1584_v42, %v461_v28  ;;  %vm1773_vm11 = vmor %vm552_vm10, %vm553_vm1 }
 0x151   : > { %v515_v43 = vsel %vm1702_vm13, %v1552_v5, %v511_v51  ;;  %v430_v47 = vsub.f32 1.5, %v429_v15  ;;  %v519_v13 = vmul.f32 0.5, %v518_v45  ;;  %vm523_vm5 = vweird.f32 %v1684_v27  ;;  %vm1805_vm10 = vmor %vm442_vm14, %vm443_vm2 }
 0x152   : > { %v594_v48 = vmul.f32 %v1548_v60, %v575_v46  ;;  %v1745_v49 = vpop.eup %1055  ;;  %v605_v50 = vadd.f32 %v1560_v7, %v586_v53  ;;  %v579_v14 = vmul.f32 %v545_v55, %v1399_v38  ;;  %v571_v8 = vmul.f32 %v465_v56, %v1431_v58  ;;  %vm524_vm1 = vmor %vm522_vm0, %vm523_vm5 }
 0x153   : > { %v576_v42 = vmul.f32 %v515_v43, %v1418_v52  ;;  %v441_v39 = vmul.f32 %v1641_v40, %v440_v44  ;;  %v431_v5 = vmul.f32 %v1651_v2, %v430_v47  ;;  %v520_v51 = vsub.f32 1.5, %v519_v13 }
 0x154   : > { %v557_v57 = vmul.f32 %v1745_v49, %v1665_v19  ;;  %vm482_vm6 = vweird.f32 %v1667_v20  ;;  %v1756_v29 = vpop.eup %1057  ;;  %v621_v52 = vmax.f32 %v605_v50, 0.0  ;;  %v613_v58 = vadd.f32 %v1560_v7, %v594_v48 }
 0x155   : > { %v598_v22 = vmul.f32 %v1548_v60, %v579_v14  ;;  %v590_v9 = vmul.f32 %v1548_v60, %v571_v8  ;;  %v521_v61 = vmul.f32 %v1684_v27, %v520_v51  ;;  %vm563_vm7 = vweird.f32 %v1745_v49 }
 0x156   : > { %v558_v28 = vmul.f32 %v1745_v49, %v557_v57  ;;  %v477_v21 = vmul.f32 %v1756_v29, %v1667_v20  ;;  %671 = vmatmul.f32.gmra.mxu0 %v621_v52  ;;  %v629_v11 = vmax.f32 %v613_v58, 0.0  ;;  %v595_v32 = vmul.f32 %v1548_v60, %v576_v42 }
 0x157   : > { %v617_v25 = vadd.f32 %v1560_v7, %v598_v22  ;;  %v609_v3 = vadd.f32 %v1560_v7, %v590_v9  ;;  %v555_v63 = vsel %vm1773_vm11, %v1608_v10, %v1707_v26  ;;  %v435_v34 = vsel %vm1786_vm8, %v1651_v2, %v431_v5 }
 0x158   : > { %v559_v33 = vmul.f32 0.5, %v558_v28  ;;  %v478_v16 = vmul.f32 %v1756_v29, %v477_v21  ;;  %695 = vmatmul.f32.gmra.mxu2 %v629_v11  ;;  %v614_v41 = vadd.f32 %v1560_v7, %v595_v32  ;;  %v580_v62 = vmul.f32 %v555_v63, %v1439_v1 }
 0x159   : > { %v633_v36 = vmax.f32 %v617_v25, 0.0  ;;  %v625_v30 = vmax.f32 %v609_v3, 0.0  ;;  %v568_v59 = vmul.f32 %v435_v34, %v1449_v6  ;;  %v475_v26 = vsel %vm1762_vm9, %v1592_v54, %v1695_v31 }
 0x15a   : > { %v560_v10 = vsub.f32 1.5, %v559_v33  ;;  %v479_v2 = vmul.f32 0.5, %v478_v16  ;;  %vm483_vm12 = vweird.f32 %v1756_v29  ;;  %v599_v1 = vmul.f32 %v1548_v60, %v580_v62 }
 0x15b   : > { %707 = vmatmul.f32.gmra.mxu3 %v633_v36  ;;  %683 = vmatmul.f32.gmra.mxu1 %v625_v30  ;;  %v572_v44 = vmul.f32 %v475_v26, %v1436_v0  ;;  %v525_v4 = vsel %vm524_vm1, %v1684_v27, %v521_v61  ;;  %v587_v6 = vmul.f32 %v1548_v60, %v568_v59  ;;  %vm562_vm13 = vweird.f32 %v1665_v19  ;;  %vm484_vm2 = vmor %vm482_vm6, %vm483_vm12 }
 0x15c   : > { %v561_v15 = vmul.f32 %v1745_v49, %v560_v10  ;;  %v480_v45 = vsub.f32 1.5, %v479_v2  ;;  %v577_v46 = vmul.f32 %v525_v4, %v1457_v18  ;;  %v618_v54 = vadd.f32 %v1560_v7, %v599_v1  ;;  %vm1835_vm14 = vmor %vm562_vm13, %vm563_vm7 }
 0x15d   : > { %v591_v31 = vmul.f32 %v1548_v60, %v572_v44  ;;  %v445_v53 = vsel %vm1805_vm10, %v1641_v40, %v441_v39  ;;  %v606_v18 = vadd.f32 %v1560_v7, %v587_v6  ;;  %v630_v40 = vmax.f32 %v614_v41, 0.0 }
 0x15e   : > { %v481_v27 = vmul.f32 %v1756_v29, %v480_v45  ;;  %v596_v19 = vmul.f32 %v1548_v60, %v577_v46  ;;  %v569_v55 = vmul.f32 %v445_v53, %v1454_v17  ;;  %v634_v56 = vmax.f32 %v618_v54, 0.0 }
 0x15f   : > { %v610_v43 = vadd.f32 %v1560_v7, %v591_v31  ;;  %v565_v47 = vsel %vm1835_vm14, %v1745_v49, %v561_v15  ;;  %v622_v13 = vmax.f32 %v606_v18, 0.0 }
 0x160   : > { %v588_v48 = vmul.f32 %v1548_v60, %v569_v55  ;;  %v485_v50 = vsel %vm484_vm2, %v1756_v29, %v481_v27  ;;  %698 = vmatmul.f32.gmra.mxu2 %v630_v40  ;;  %v615_v14 = vadd.f32 %v1560_v7, %v596_v19  ;;  %v581_v8 = vmul.f32 %v565_v47, %v1467_v23 }
 0x161   : > { %v626_v17 = vmax.f32 %v610_v43, 0.0  ;;  %v573_v20 = vmul.f32 %v485_v50, %v1471_v24  ;;  %674 = vmatmul.f32.gmra.mxu0 %v622_v13 }
 0x162   : > { %v600_v49 = vmul.f32 %v1548_v60, %v581_v8  ;;  %v607_v39 = vadd.f32 %v1560_v7, %v588_v48  ;;  %v631_v5 = vmax.f32 %v615_v14, 0.0 }
 0x163   : > { %710 = vmatmul.f32.gmra.mxu3 %v634_v56  ;;  %686 = vmatmul.f32.gmra.mxu1 %v626_v17  ;;  %v592_v42 = vmul.f32 %v1548_v60, %v573_v20 }
 0x164   : > { %v619_v57 = vadd.f32 %v1560_v7, %v600_v49  ;;  %v623_v24 = vmax.f32 %v607_v39, 0.0 }
 0x165   : > { %v611_v51 = vadd.f32 %v1560_v7, %v592_v42 }
 0x166   : > { %v635_v38 = vmax.f32 %v619_v57, 0.0 }
 0x167   : > { %v627_v29 = vmax.f32 %v611_v51, 0.0 }
 0x168   : > { %701 = vmatmul.f32.gmra.mxu2 %v631_v5 }
 0x169   : > { %677 = vmatmul.f32.gmra.mxu0 %v623_v24 }
 0x16b   : > { %689 = vmatmul.f32.gmra.mxu1 %v627_v29  ;;  %713 = vmatmul.f32.gmra.mxu3 %v635_v38 }
 0x1ba   : > { %v669_v23 = vpop.f32.mrf.mxu0 }
 0x1c0   : > { %v693_v58 = vpop.f32.mrf.mxu2 }
 0x1ca   : > { %v681_v52 = vpop.f32.mrf.mxu1 }
 0x1d0   : > { %v705_v22 = vpop.f32.mrf.mxu3 }
 0x1d3   : > { %v672_v60 = vpop.f32.mrf.mxu0 }
 0x1d4   : > { %v869_v9 = vpack.c.bf16 %v672_v60, %v669_v23 }
 0x1d6   : > { %870 = vst [vmem:[%s1862_s25] sm:$0xff] %v869_v9  }
 0x1d8   : > { %v684_v7 = vpop.f32.mrf.mxu1 }
 0x1d9   : > { %v879_v37 = vpack.c.bf16 %v684_v7, %v681_v52 }
 0x1db   : > { %907 = vst [vmem:[%s1862_s25 + $0x10] sm:$0xff] %v879_v37   ;;  %v696_v61 = vpop.f32.mrf.mxu2 }
 0x1dc   : > { %v889_v28 = vpack.c.bf16 %v696_v61, %v693_v58 }
 0x1de   : > { %v708_v21 = vpop.f32.mrf.mxu3  ;;  %909 = vst [vmem:[%s1862_s25 + $0x20] sm:$0xff] %v889_v28   ;;  %v675_v11 = vpop.f32.mrf.mxu0 }
 0x1df   : > { %v899_v12 = vpack.c.bf16 %v708_v21, %v705_v22 }
 0x1e0   : > { %v687_v25 = vpop.f32.mrf.mxu1 }
 0x1e1   : > { %911 = vst [vmem:[%s1862_s25 + $0x30] sm:$0xff] %v899_v12  }
 0x1e3   : > { %v699_v3 = vpop.f32.mrf.mxu2 }
 0x1e6   : > { %v711_v32 = vpop.f32.mrf.mxu3  ;;  %v678_v33 = vpop.f32.mrf.mxu0 }
 0x1e7   : > { %v874_v16 = vpack.c.bf16 %v678_v33, %v675_v11 }
 0x1e8   : > { %v690_v63 = vpop.f32.mrf.mxu1 }
 0x1e9   : > { %v884_v34 = vpack.c.bf16 %v690_v63, %v687_v25  ;;  %906 = vst [vmem:[%s1862_s25 + $0x8] sm:$0xff] %v874_v16  }
 0x1eb   : > { %908 = vst [vmem:[%s1862_s25 + $0x18] sm:$0xff] %v884_v34   ;;  %v702_v35 = vpop.f32.mrf.mxu2 }
 0x1ec   : > { %v894_v36 = vpack.c.bf16 %v702_v35, %v699_v3 }
 0x1ee   : > { %v714_v30 = vpop.f32.mrf.mxu3  ;;  %910 = vst [vmem:[%s1862_s25 + $0x28] sm:$0xff] %v894_v36  }
 0x1ef   : > { %v904_v41 = vpack.c.bf16 %v714_v30, %v711_v32 }
 0x1f1   : > { %912 = vst [vmem:[%s1862_s25 + $0x38] sm:$0xff] %v904_v41  }
 0x1f2   : > { %1146 = shalt.err (!%p1143_p10)
}
 0x1f3   : > { %s1195_s10 = smov 64   ;;  %s1196_s5 = smov 4  }
 0x1f4   : > { %967 = dma.vmem_to_hbm [thread:$0]  (%p1291_p3), %s763_s12, 1024, %s765_s14, %s750_s19, %s1195_s10, %s1195_s10, %s1196_s5  }
 0x1f5 PF: > { %s779_s23 = sand.u32 1, %s1177_s15   ;;  %p1940_p12 = scmp.ge.s32.totalorder %s1189_s18, 2 }
 0x1f6   : > { %s780_s25 = scalar_lea.sflag [#allocation4], %s779_s23 }
 0x1f7   : > { %p978_p13 = pnand %p1940_p12, %p1257_p6 }
 0x1f9   : > { %p979_p0 = pneg %p978_p13 }
 0x1fb   : > { %1172 = dma.done.wait (%p979_p0), %s780_s25, 1024  }
 0x1fc   : > { %1174 = vsyncadd (%p979_p0), %s780_s25, 4294966272  ;;  %p18_p5 = scmp.ge.s32.totalorder %s1275_s29, 4   ;;  %s1941_s15 = smov %s1181_s16 }
 0x1fd   : > { %s1942_s16 = smov %s1185_s17  ;;  %s1943_s17 = smov %s1287_s8 }
 0x1fe   : > { %s1944_s18 = smov %s1275_s29  ;;  %20 = sbr.rel (!%p18_p5) target bundleno = 6 (0x6), region = 85 }
 0x203   :  { %786 = vsyncpa [#allocation3], 1 }
 0x204   :  { %788 = vsyncpa [#allocation3 + $0x1], 1 }
 0x205   :  { %789 = vsyncpa [#allocation6], 1 }
 0x206   :  { %790 = vsyncpa [#allocation4], 1 }
 0x207   :  { %792 = vsyncpa [#allocation4 + $0x1], 1 }

</bundles_post_ra>
